<compile_context>
chip_gen: v7x
topology: tpu7x:2x2x1
jax: 0.10.0
libtpu: 0.0.40
codegen_flags: <defaults>
</compile_context>

<pallas_src>
import functools

import jax
import jax.numpy as jnp
from jax.experimental import pallas as pl
from jax.experimental.pallas import tpu as pltpu

IN = 1
HIDDEN = 128
OUT = 1
OUT_PAD = 128          # lane-dense output width (>= 128 lanes)
DEFAULT_TB = 256       # batch tile (rows per grid step)


def _round_up(n, m):
    return ((n + m - 1) // m) * m


# ---------------------------------------------------------------------------
# Fused 4-layer MLP kernel: one (TB, 1) batch tile per grid step, all weights
# resident in VMEM via full-block specs.
# ---------------------------------------------------------------------------
def _mlp_kernel(x_ref, w1_ref, b1_ref, w2_ref, b2_ref, wo_ref, bo_ref, o_ref):
    x = x_ref[...]                                          # (TB, 1) f32
    # Layer 1 (Linear(1,128)): K == 1 -> VPU broadcast multiply, not a matmul.
    h = jnp.maximum(x * w1_ref[...] + b1_ref[...], 0.0)     # (TB, 128)
    # Layer 2 (hidden_layer_two).
    h = jnp.maximum(
        jnp.dot(h, w2_ref[...], preferred_element_type=jnp.float32) + b2_ref[...],
        0.0)
    # Layer 3: the torch forward reuses hidden_layer_two's weights/bias.
    h = jnp.maximum(
        jnp.dot(h, w2_ref[...], preferred_element_type=jnp.float32) + b2_ref[...],
        0.0)
    # Output layer, zero-padded to 128 lanes -> unmasked lane-dense store.
    y = jnp.dot(h, wo_ref[...], preferred_element_type=jnp.float32) + bo_ref[...]
    o_ref[...] = y.astype(o_ref.dtype)                      # (TB, 128)


@functools.partial(jax.jit, static_argnames=("tb",))
def regression_forward(x, params, tb=DEFAULT_TB):
    """Forward pass: x (B, 1) float32 -> predictions (B, 1) float32."""
    B = x.shape[0]
    tb = min(tb, _round_up(max(B, 1), 8))        # shrink tile for small batches
    Bp = _round_up(B, tb)
    x_pad = jnp.pad(x.astype(jnp.float32), ((0, Bp - B), (0, 0)))

    # Zero-pad the 1-wide output layer to 128 lanes; padded columns are exactly
    # zero, contribute nothing, and are sliced off below.
    wo_pad = jnp.pad(params["w_out"], ((0, 0), (0, OUT_PAD - OUT)))
    bo_pad = jnp.pad(params["b_out"], ((0, 0), (0, OUT_PAD - OUT)))

    full = lambda shape: pl.BlockSpec(shape, lambda i: (0,) * len(shape))

    out = pl.pallas_call(
        _mlp_kernel,
        out_shape=jax.ShapeDtypeStruct((Bp, OUT_PAD), jnp.float32),
        grid=(Bp // tb,),
        in_specs=[
            pl.BlockSpec((tb, IN), lambda i: (i, 0)),       # x batch tile
            full((IN, HIDDEN)), full((1, HIDDEN)),          # W1, b1
            full((HIDDEN, HIDDEN)), full((1, HIDDEN)),      # W2, b2 (used twice)
            full((HIDDEN, OUT_PAD)), full((1, OUT_PAD)),    # Wo, bo (lane-padded)
        ],
        out_specs=pl.BlockSpec((tb, OUT_PAD), lambda i: (i, 0)),
        compiler_params=pltpu.CompilerParams(
            dimension_semantics=("parallel",),
            vmem_limit_bytes=32 * 1024 * 1024),
    )(x_pad, params["w1"], params["b1"], params["w2"], params["b2"],
      wo_pad, bo_pad)

    return out[:B, :OUT]


# ---------------------------------------------------------------------------
# Pure-JAX reference (mirrors the torch forward, including layer-two reuse).
# ---------------------------------------------------------------------------
def _reference_forward(x, params):
    h1 = jax.nn.relu(x @ params["w1"] + params["b1"])
    h2 = jax.nn.relu(h1 @ params["w2"] + params["b2"])
    h3 = jax.nn.relu(h2 @ params["w2"] + params["b2"])      # hidden_layer_two reused
    return h3 @ params["w_out"] + params["b_out"]


def init_params(key):
    # torch Linear default init: U(-1/sqrt(fan_in), 1/sqrt(fan_in)).
    def lin(kw, kb, fan_in, fan_out):
        bound = 1.0 / (fan_in ** 0.5)
        w = jax.random.uniform(kw, (fan_in, fan_out), jnp.float32, -bound, bound)
        b = jax.random.uniform(kb, (1, fan_out), jnp.float32, -bound, bound)
        return w, b

    k1, k2, k3, k4, k5, k6 = jax.random.split(key, 6)
    w1, b1 = lin(k1, k2, IN, HIDDEN)
    w2, b2 = lin(k3, k4, HIDDEN, HIDDEN)
    wo, bo = lin(k5, k6, HIDDEN, OUT)
    # NOTE: hidden_layer_three exists in the torch __init__ but is never used
    # in forward(), so it is intentionally omitted here.
    return {"w1": w1, "b1": b1, "w2": w2, "b2": b2, "w_out": wo, "b_out": bo}


if __name__ == "__main__":
    key = jax.random.PRNGKey(0)
    pkey, xkey = jax.random.split(key)
    params = init_params(pkey)

    B = 64  # matches the DataLoader batch size used in RegressionModel.train
    two_pi = 2.0 * jnp.pi
    x = jax.random.uniform(xkey, (B, IN), jnp.float32, -two_pi, two_pi)

    out = regression_forward(x, params)
    out = jax.block_until_ready(out)

    ref = _reference_forward(x, params)
    assert out.shape == (B, OUT)
    assert jnp.allclose(out, ref, atol=1e-4, rtol=1e-4), "mismatch vs reference"

    print("KERNEL_OK")
</pallas_src>

<mosaic_0001>
module attributes {stable_mosaic.version = 11 : i64} {
  func.func @_mlp_kernel(%arg0: i32, %arg1: memref<64x1xf32, #tpu.memory_space<vmem>>, %arg2: memref<1x128xf32, #tpu.memory_space<vmem>>, %arg3: memref<1x128xf32, #tpu.memory_space<vmem>>, %arg4: memref<128x128xf32, #tpu.memory_space<vmem>>, %arg5: memref<1x128xf32, #tpu.memory_space<vmem>>, %arg6: memref<128x128xf32, #tpu.memory_space<vmem>>, %arg7: memref<1x128xf32, #tpu.memory_space<vmem>>, %arg8: memref<64x128xf32, #tpu.memory_space<vmem>>) attributes {dimension_semantics = [#tpu.dimension_semantics<parallel>], iteration_bounds = array<i64: 1>, scalar_prefetch = 0 : i64, scratch_operands = 0 : i64, tpu.core_type = #tpu.core_type<tc>, window_params = [{transform_indices = @transform_0, window_bounds = array<i64: 64, 1>}, {pipeline_mode = #tpu.pipeline_mode<synchronous>, transform_indices = @transform_1, window_bounds = array<i64: 1, 128>}, {pipeline_mode = #tpu.pipeline_mode<synchronous>, transform_indices = @transform_2, window_bounds = array<i64: 1, 128>}, {pipeline_mode = #tpu.pipeline_mode<synchronous>, transform_indices = @transform_3, window_bounds = array<i64: 128, 128>}, {pipeline_mode = #tpu.pipeline_mode<synchronous>, transform_indices = @transform_4, window_bounds = array<i64: 1, 128>}, {pipeline_mode = #tpu.pipeline_mode<synchronous>, transform_indices = @transform_5, window_bounds = array<i64: 128, 128>}, {pipeline_mode = #tpu.pipeline_mode<synchronous>, transform_indices = @transform_6, window_bounds = array<i64: 1, 128>}, {transform_indices = @transform_7, window_bounds = array<i64: 64, 128>}]} {
    %c0 = arith.constant 0 : index
    %c0_0 = arith.constant 0 : index
    %0 = vector.load %arg1[%c0, %c0_0] : memref<64x1xf32, #tpu.memory_space<vmem>>, vector<64x1xf32>
    %c0_1 = arith.constant 0 : index
    %c0_2 = arith.constant 0 : index
    %1 = vector.load %arg2[%c0_1, %c0_2] : memref<1x128xf32, #tpu.memory_space<vmem>>, vector<1x128xf32>
    %2 = vector.broadcast %0 : vector<64x1xf32> to vector<64x128xf32>
    %3 = vector.broadcast %1 : vector<1x128xf32> to vector<64x128xf32>
    %4 = arith.mulf %2, %3 : vector<64x128xf32>
    %c0_3 = arith.constant 0 : index
    %c0_4 = arith.constant 0 : index
    %5 = vector.load %arg3[%c0_3, %c0_4] : memref<1x128xf32, #tpu.memory_space<vmem>>, vector<1x128xf32>
    %6 = vector.broadcast %5 : vector<1x128xf32> to vector<64x128xf32>
    %7 = arith.addf %4, %6 : vector<64x128xf32>
    %cst = arith.constant 0.000000e+00 : f32
    %8 = vector.broadcast %cst : f32 to vector<64x128xf32>
    %9 = arith.maximumf %7, %8 : vector<64x128xf32>
    %c0_5 = arith.constant 0 : index
    %c0_6 = arith.constant 0 : index
    %10 = vector.load %arg4[%c0_5, %c0_6] : memref<128x128xf32, #tpu.memory_space<vmem>>, vector<128x128xf32>
    %cst_7 = arith.constant dense<0.000000e+00> : vector<64x128xf32>
    %11 = tpu.matmul %9, %10, %cst_7 {dimension_numbers = #tpu.dot_dimension_numbers<[1], [0], [0], [1], [0, 0, 1, 1], [], []>} : vector<64x128xf32>, vector<128x128xf32>, vector<64x128xf32> -> vector<64x128xf32>
    %c0_8 = arith.constant 0 : index
    %c0_9 = arith.constant 0 : index
    %12 = vector.load %arg5[%c0_8, %c0_9] : memref<1x128xf32, #tpu.memory_space<vmem>>, vector<1x128xf32>
    %13 = vector.broadcast %12 : vector<1x128xf32> to vector<64x128xf32>
    %14 = arith.addf %11, %13 : vector<64x128xf32>
    %cst_10 = arith.constant 0.000000e+00 : f32
    %15 = vector.broadcast %cst_10 : f32 to vector<64x128xf32>
    %16 = arith.maximumf %14, %15 : vector<64x128xf32>
    %c0_11 = arith.constant 0 : index
    %c0_12 = arith.constant 0 : index
    %17 = vector.load %arg4[%c0_11, %c0_12] : memref<128x128xf32, #tpu.memory_space<vmem>>, vector<128x128xf32>
    %cst_13 = arith.constant dense<0.000000e+00> : vector<64x128xf32>
    %18 = tpu.matmul %16, %17, %cst_13 {dimension_numbers = #tpu.dot_dimension_numbers<[1], [0], [0], [1], [0, 0, 1, 1], [], []>} : vector<64x128xf32>, vector<128x128xf32>, vector<64x128xf32> -> vector<64x128xf32>
    %c0_14 = arith.constant 0 : index
    %c0_15 = arith.constant 0 : index
    %19 = vector.load %arg5[%c0_14, %c0_15] : memref<1x128xf32, #tpu.memory_space<vmem>>, vector<1x128xf32>
    %20 = vector.broadcast %19 : vector<1x128xf32> to vector<64x128xf32>
    %21 = arith.addf %18, %20 : vector<64x128xf32>
    %cst_16 = arith.constant 0.000000e+00 : f32
    %22 = vector.broadcast %cst_16 : f32 to vector<64x128xf32>
    %23 = arith.maximumf %21, %22 : vector<64x128xf32>
    %c0_17 = arith.constant 0 : index
    %c0_18 = arith.constant 0 : index
    %24 = vector.load %arg6[%c0_17, %c0_18] : memref<128x128xf32, #tpu.memory_space<vmem>>, vector<128x128xf32>
    %cst_19 = arith.constant dense<0.000000e+00> : vector<64x128xf32>
    %25 = tpu.matmul %23, %24, %cst_19 {dimension_numbers = #tpu.dot_dimension_numbers<[1], [0], [0], [1], [0, 0, 1, 1], [], []>} : vector<64x128xf32>, vector<128x128xf32>, vector<64x128xf32> -> vector<64x128xf32>
    %c0_20 = arith.constant 0 : index
    %c0_21 = arith.constant 0 : index
    %26 = vector.load %arg7[%c0_20, %c0_21] : memref<1x128xf32, #tpu.memory_space<vmem>>, vector<1x128xf32>
    %27 = vector.broadcast %26 : vector<1x128xf32> to vector<64x128xf32>
    %28 = arith.addf %25, %27 : vector<64x128xf32>
    %c0_22 = arith.constant 0 : index
    %c0_23 = arith.constant 0 : index
    %29 = vector.load %arg8[%c0_22, %c0_23] : memref<64x128xf32, #tpu.memory_space<vmem>>, vector<64x128xf32>
    tpu.vector_store %arg8[%c0_22, %c0_23], %28 {strides = array<i32>} : memref<64x128xf32, #tpu.memory_space<vmem>>, vector<64x128xf32>,
    return
  }
  func.func @transform_0(%arg0: i32) -> (i32, i32) {
    %c0_i32 = arith.constant 0 : i32
    %c0_i32_0 = arith.constant 0 : i32
    return %arg0, %c0_i32 : i32, i32
  }
  func.func @transform_1(%arg0: i32) -> (i32, i32) {
    %c0_i32 = arith.constant 0 : i32
    %c0_i32_0 = arith.constant 0 : i32
    %c0_i32_1 = arith.constant 0 : i32
    return %c0_i32, %c0_i32_0 : i32, i32
  }
  func.func @transform_2(%arg0: i32) -> (i32, i32) {
    %c0_i32 = arith.constant 0 : i32
    %c0_i32_0 = arith.constant 0 : i32
    %c0_i32_1 = arith.constant 0 : i32
    return %c0_i32, %c0_i32_0 : i32, i32
  }
  func.func @transform_3(%arg0: i32) -> (i32, i32) {
    %c0_i32 = arith.constant 0 : i32
    %c0_i32_0 = arith.constant 0 : i32
    %c0_i32_1 = arith.constant 0 : i32
    return %c0_i32, %c0_i32_0 : i32, i32
  }
  func.func @transform_4(%arg0: i32) -> (i32, i32) {
    %c0_i32 = arith.constant 0 : i32
    %c0_i32_0 = arith.constant 0 : i32
    %c0_i32_1 = arith.constant 0 : i32
    return %c0_i32, %c0_i32_0 : i32, i32
  }
  func.func @transform_5(%arg0: i32) -> (i32, i32) {
    %c0_i32 = arith.constant 0 : i32
    %c0_i32_0 = arith.constant 0 : i32
    %c0_i32_1 = arith.constant 0 : i32
    return %c0_i32, %c0_i32_0 : i32, i32
  }
  func.func @transform_6(%arg0: i32) -> (i32, i32) {
    %c0_i32 = arith.constant 0 : i32
    %c0_i32_0 = arith.constant 0 : i32
    %c0_i32_1 = arith.constant 0 : i32
    return %c0_i32, %c0_i32_0 : i32, i32
  }
  func.func @transform_7(%arg0: i32) -> (i32, i32) {
    %c0_i32 = arith.constant 0 : i32
    %c0_i32_0 = arith.constant 0 : i32
    return %arg0, %c0_i32 : i32, i32
  }
}

</mosaic_0001>

<bundles_post_ra>
// kernel: regression_forward.1
= control target key start
LH: loop header
LB: loop body
LE: loop exit
PB: predicated region body
PF: predicated region fallthrough
CT: control target
= control target key end

     0   :  { %v824_v0 = vmov 0   ;;  %s1039_s0 = inlined_call_operand.vmem [shape: f32[64,1], index: 0, kind: input, shape index: {}]   ;;  %s1040_s3 = inlined_call_operand.vmem [shape: f32[128,128], index: 3, kind: input, shape index: {}]   ;;  %s1041_s1 = inlined_call_operand.vmem [shape: f32[1,128], index: 1, kind: input, shape index: {}]   ;;  %s1042_s2 = inlined_call_operand.vmem [shape: f32[1,128], index: 2, kind: input, shape index: {}]   ;;  %s1043_s5 = inlined_call_operand.vmem [shape: f32[128,128], index: 5, kind: input, shape index: {}]   ;;  %s1044_s4 = inlined_call_operand.vmem [shape: f32[1,128], index: 4, kind: input, shape index: {}]   ;;  %s1045_s6 = inlined_call_operand.vmem [shape: f32[1,128], index: 6, kind: input, shape index: {}]   ;;  %s1046_s7 = inlined_call_operand.vmem [shape: f32[64,128], index: 7, kind: output, shape index: {}]  }
   0x1   :  { %823 = vset.pattern.permute.xlu1 %v824_v0  ;;  %822 = vset.pattern.permute.xlu0 %v824_v0  ;;  %v28_v1 = vld [vmem:[%s1039_s0 + $0x10] sm:$0xff]  ;;  %v26_v2 = vld [vmem:[%s1039_s0] sm:$0xff]  ;;  %v29_v3 = vld [vmem:[%s1039_s0 + $0x18] sm:$0xff] }
   0x2   :  { %47 = vperm.xlu1 %823, %v28_v1   ;;  %37 = vperm.xlu0 %822, %v26_v2   ;;  %v27_v4 = vld [vmem:[%s1039_s0 + $0x8] sm:$0xff]  ;;  %v112_v5 = vld [vmem:[%s1040_s3] sm:$0xff]  ;;  %v114_v7 = vld [vmem:[%s1040_s3 + $0x10] sm:$0xff] }
   0x3   :  { %v113_v6 = vld [vmem:[%s1040_s3 + $0x8] sm:$0xff]  ;;  %v115_v8 = vld [vmem:[%s1040_s3 + $0x18] sm:$0xff]  ;;  %v116_v11 = vld [vmem:[%s1040_s3 + $0x20] sm:$0xff] }
   0x4   :  { %v709_v9 = vpack.c.bf16 %v113_v6, %v112_v5  ;;  %v713_v10 = vpack.c.bf16 %v115_v8, %v114_v7  ;;  %v117_v12 = vld [vmem:[%s1040_s3 + $0x28] sm:$0xff]  ;;  %v30_v14 = vld [vmem:[%s1039_s0 + $0x20] sm:$0xff]  ;;  %v118_v16 = vld [vmem:[%s1040_s3 + $0x30] sm:$0xff] }
   0x5   :  { %v31_v13 = vld [vmem:[%s1039_s0 + $0x28] sm:$0xff]  ;;  %v717_v15 = vpack.c.bf16 %v117_v12, %v116_v11  ;;  %v119_v17 = vld [vmem:[%s1040_s3 + $0x38] sm:$0xff]  ;;  %v32_v19 = vld [vmem:[%s1039_s0 + $0x30] sm:$0xff] }
   0x6   :  { %52 = vperm.xlu1 %823, %v29_v3   ;;  %42 = vperm.xlu0 %822, %v27_v4   ;;  %v33_v18 = vld [vmem:[%s1039_s0 + $0x38] sm:$0xff]  ;;  %v721_v20 = vpack.c.bf16 %v119_v17, %v118_v16  ;;  %v120_v21 = vld [vmem:[%s1040_s3 + $0x40] sm:$0xff]  ;;  %v121_v22 = vld [vmem:[%s1040_s3 + $0x48] sm:$0xff] }
   0x7   :  { %710 = vmatprep.subr.bf16.mxu0 %v709_v9  ;;  %742 = vmatprep.subr.bf16.mxu1 %v709_v9  ;;  %v725_v23 = vpack.c.bf16 %v121_v22, %v120_v21  ;;  %v122_v24 = vld [vmem:[%s1040_s3 + $0x50] sm:$0xff]  ;;  %v123_v25 = vld [vmem:[%s1040_s3 + $0x58] sm:$0xff]  ;;  %v124_v27 = vld [vmem:[%s1040_s3 + $0x60] sm:$0xff] }
   0x8   :  { %712 = vmatpush3.bf16.msra.mxu0 %v709_v9  ;;  %744 = vmatpush3.bf16.msra.mxu1 %v709_v9  ;;  %v729_v26 = vpack.c.bf16 %v123_v25, %v122_v24  ;;  %v125_v28 = vld [vmem:[%s1040_s3 + $0x68] sm:$0xff]  ;;  %v126_v30 = vld [vmem:[%s1040_s3 + $0x70] sm:$0xff]  ;;  %v127_v31 = vld [vmem:[%s1040_s3 + $0x78] sm:$0xff] }
   0x9   :  { %714 = vmatprep.subr.bf16.mxu0 %v713_v10  ;;  %746 = vmatprep.subr.bf16.mxu1 %v713_v10  ;;  %v733_v29 = vpack.c.bf16 %v125_v28, %v124_v27  ;;  %v737_v32 = vpack.c.bf16 %v127_v31, %v126_v30  ;;  %v501_v33 = vld [vmem:[%s1041_s1] ss:$0 sm:$0xff]  ;;  %v362_v4 = vld [vmem:[%s1043_s5 + $0x8] sm:$0xff]  ;;  %v363_v5 = vld [vmem:[%s1043_s5 + $0x10] sm:$0xff] }
   0xa   :  { %62 = vperm.xlu1 %823, %v31_v13   ;;  %57 = vperm.xlu0 %822, %v30_v14   ;;  %v502_v34 = vld [vmem:[%s1042_s2] ss:$0 sm:$0xff]  ;;  %v364_v7 = vld [vmem:[%s1043_s5 + $0x18] sm:$0xff]  ;;  %v367_v12 = vld [vmem:[%s1043_s5 + $0x30] sm:$0xff] }
   0xb   :  { %v361_v3 = vld [vmem:[%s1043_s5] sm:$0xff]  ;;  %v777_v8 = vpack.c.bf16 %v364_v7, %v363_v5  ;;  %v368_v13 = vld [vmem:[%s1043_s5 + $0x38] sm:$0xff]  ;;  %v370_v16 = vld [vmem:[%s1043_s5 + $0x48] sm:$0xff] }
   0xc   :  { %716 = vmatpush3.bf16.msra.mxu0 %v713_v10  ;;  %748 = vmatpush3.bf16.msra.mxu1 %v713_v10  ;;  %v773_v6 = vpack.c.bf16 %v362_v4, %v361_v3  ;;  %v365_v9 = vld [vmem:[%s1043_s5 + $0x20] sm:$0xff]  ;;  %v366_v10 = vld [vmem:[%s1043_s5 + $0x28] sm:$0xff]  ;;  %v785_v14 = vpack.c.bf16 %v368_v13, %v367_v12 }
   0xd   :  { %718 = vmatprep.subr.bf16.mxu0 %v717_v15  ;;  %750 = vmatprep.subr.bf16.mxu1 %v717_v15  ;;  %v781_v11 = vpack.c.bf16 %v366_v10, %v365_v9  ;;  %v373_v21 = vld [vmem:[%s1043_s5 + $0x60] sm:$0xff]  ;;  %v374_v22 = vld [vmem:[%s1043_s5 + $0x68] sm:$0xff] }
   0xe   :  { %72 = vperm.xlu1 %823, %v33_v18   ;;  %67 = vperm.xlu0 %822, %v32_v19   ;;  %v371_v18 = vld [vmem:[%s1043_s5 + $0x50] sm:$0xff]  ;;  %v372_v19 = vld [vmem:[%s1043_s5 + $0x58] sm:$0xff]  ;;  %v988_v24 = vld [vmem:[%s1044_s4] ss:$0 sm:$0xff] }
   0xf   :  { %v504_v12 = vld [vmem:[%s1045_s6] ss:$0 sm:$0xff] }
  0x10   :  { %720 = vmatpush3.bf16.msra.mxu0 %v717_v15  ;;  %752 = vmatpush3.bf16.msra.mxu1 %v717_v15  ;;  %v369_v15 = vld [vmem:[%s1043_s5 + $0x40] sm:$0xff] }
  0x11   :  { %722 = vmatprep.subr.bf16.mxu0 %v721_v20  ;;  %754 = vmatprep.subr.bf16.mxu1 %v721_v20  ;;  %v789_v17 = vpack.c.bf16 %v370_v16, %v369_v15 }
  0x14   :  { %724 = vmatpush3.bf16.msra.mxu0 %v721_v20  ;;  %756 = vmatpush3.bf16.msra.mxu1 %v721_v20  ;;  %v793_v20 = vpack.c.bf16 %v372_v19, %v371_v18 }
  0x15   :  { %726 = vmatprep.subr.bf16.mxu0 %v725_v23  ;;  %758 = vmatprep.subr.bf16.mxu1 %v725_v23 }
  0x18   :  { %728 = vmatpush3.bf16.msra.mxu0 %v725_v23  ;;  %760 = vmatpush3.bf16.msra.mxu1 %v725_v23  ;;  %v797_v23 = vpack.c.bf16 %v374_v22, %v373_v21 }
  0x19   :  { %730 = vmatprep.subr.bf16.mxu0 %v729_v26  ;;  %762 = vmatprep.subr.bf16.mxu1 %v729_v26 }
  0x1c   :  { %732 = vmatpush3.bf16.msra.mxu0 %v729_v26  ;;  %764 = vmatpush3.bf16.msra.mxu1 %v729_v26 }
  0x1d   :  { %734 = vmatprep.subr.bf16.mxu0 %v733_v29  ;;  %766 = vmatprep.subr.bf16.mxu1 %v733_v29 }
  0x20   :  { %736 = vmatpush3.bf16.msra.mxu0 %v733_v29  ;;  %768 = vmatpush3.bf16.msra.mxu1 %v733_v29 }
  0x21   :  { %738 = vmatprep.subr.bf16.mxu0 %v737_v32  ;;  %770 = vmatprep.subr.bf16.mxu1 %v737_v32 }
  0x24   :  { %740 = vmatpush3.bf16.msra.mxu0 %v737_v32  ;;  %772 = vmatpush3.bf16.msra.mxu1 %v737_v32 }
  0x25   :  { %774 = vmatprep.subr.bf16.mxu0 %v773_v6  ;;  %805 = vmatprep.subr.bf16.mxu1 %v773_v6 }
  0x81   :  { %v48_v35 = vpop.permute.xlu1 %47  ;;  %v38_v36 = vpop.permute.xlu0 %37 }
  0x82   :  { %v83_v37 = vmul.f32 %v501_v33, %v48_v35  ;;  %v81_v38 = vmul.f32 %v501_v33, %v38_v36 }
  0x84   :  { %v96_v39 = vadd.f32 %v502_v34, %v81_v38  ;;  %v98_v40 = vadd.f32 %v502_v34, %v83_v37 }
  0x85   :  { %v53_v41 = vpop.permute.xlu1 %52  ;;  %v43_v42 = vpop.permute.xlu0 %42 }
  0x86   :  { %v84_v43 = vmul.f32 %v501_v33, %v53_v41  ;;  %v82_v44 = vmul.f32 %v501_v33, %v43_v42  ;;  %v104_v45 = vmax.f32 %v96_v39, 0.0  ;;  %v106_v47 = vmax.f32 %v98_v40, 0.0 }
  0x88   :  { %v97_v46 = vadd.f32 %v502_v34, %v82_v44  ;;  %609 = vmatprep.mubr.f32.mxu0 %v104_v45  ;;  %v99_v48 = vadd.f32 %v502_v34, %v84_v43 }
  0x89   :  { %v63_v49 = vpop.permute.xlu1 %62  ;;  %v58_v50 = vpop.permute.xlu0 %57 }
  0x8a   :  { %v105_v51 = vmax.f32 %v97_v46, 0.0  ;;  %v86_v52 = vmul.f32 %v501_v33, %v63_v49  ;;  %v85_v53 = vmul.f32 %v501_v33, %v58_v50  ;;  %v107_v55 = vmax.f32 %v99_v48, 0.0  ;;  %v375_v49 = vld [vmem:[%s1043_s5 + $0x70] sm:$0xff]  ;;  %v376_v50 = vld [vmem:[%s1043_s5 + $0x78] sm:$0xff] }
  0x8c   :  { %v100_v54 = vadd.f32 %v502_v34, %v85_v53  ;;  %610 = vmatmul.mubr.f32.vlgmr.msra.gmra.mrb[0].mxu0 %v105_v51  ;;  %v101_v58 = vadd.f32 %v502_v34, %v86_v52  ;;  %v801_v51 = vpack.c.bf16 %v376_v50, %v375_v49 }
  0x8d   :  { %v73_v56 = vpop.permute.xlu1 %72  ;;  %612 = vmatprep.mubr.f32.mxu0 %v106_v47  ;;  %v68_v57 = vpop.permute.xlu0 %67  ;;  %776 = vmatpush3.bf16.msra.mxu0 %v773_v6 }
  0x8e   :  { %v108_v59 = vmax.f32 %v100_v54, 0.0  ;;  %v88_v60 = vmul.f32 %v501_v33, %v73_v56  ;;  %v87_v61 = vmul.f32 %v501_v33, %v68_v57  ;;  %v109_v63 = vmax.f32 %v101_v58, 0.0  ;;  %778 = vmatprep.subr.bf16.mxu0 %v777_v8 }
  0x90   :  { %v102_v62 = vadd.f32 %v502_v34, %v87_v61  ;;  %613 = vmatmul.mubr.f32.gmra.mrb[2].mxu0 %v107_v55  ;;  %v103_v0 = vadd.f32 %v502_v34, %v88_v60 }
  0x91   :  { %615 = vmatprep.mubr.f32.mxu0 %v108_v59  ;;  %780 = vmatpush3.bf16.msra.mxu0 %v777_v8 }
  0x92   :  { %v110_v1 = vmax.f32 %v102_v62, 0.0  ;;  %v111_v2 = vmax.f32 %v103_v0, 0.0  ;;  %782 = vmatprep.subr.bf16.mxu0 %v781_v11 }
  0x94   :  { %616 = vmatmul.mubr.f32.gmra.mrb[4].mxu0 %v109_v63 }
  0x95   :  { %618 = vmatprep.mubr.f32.mxu0 %v110_v1  ;;  %784 = vmatpush3.bf16.msra.mxu0 %v781_v11 }
  0x96   :  { %786 = vmatprep.subr.bf16.mxu0 %v785_v14 }
  0x98   :  { %619 = vmatmul.mubr.f32.gmra.mrb[6].mxu0 %v111_v2 }
  0x99   :  { %788 = vmatpush3.bf16.msra.mxu0 %v785_v14 }
  0x9a   :  { %790 = vmatprep.subr.bf16.mxu0 %v789_v17 }
  0x9d   :  { %792 = vmatpush3.bf16.msra.mxu0 %v789_v17 }
  0x9e   :  { %794 = vmatprep.subr.bf16.mxu0 %v793_v20 }
  0xa1   :  { %796 = vmatpush3.bf16.msra.mxu0 %v793_v20 }
  0xa2   :  { %798 = vmatprep.subr.bf16.mxu0 %v797_v23 }
  0xa5   :  { %800 = vmatpush3.bf16.msra.mxu0 %v797_v23 }
  0xa6   :  { %802 = vmatprep.subr.bf16.mxu0 %v801_v51 }
  0xa9   :  { %804 = vmatpush3.bf16.msra.mxu0 %v801_v51 }
 0x15f   :  { %v611_v25 = vpop.f32.mrb[0].mxu0 }
 0x160   :  { %v207_v26 = vadd.f32 %v611_v25, %v988_v24  ;;  %v201_v27 = vpop.f32.mrb[1].mxu0 }
 0x161   :  { %v202_v28 = vadd.f32 %v988_v24, %v201_v27 }
 0x162   :  { %v241_v31 = vmax.f32 %v207_v26, 0.0 }
 0x163   :  { %v614_v29 = vpop.f32.mrb[2].mxu0  ;;  %v240_v30 = vmax.f32 %v202_v28, 0.0 }
 0x164   :  { %v217_v32 = vadd.f32 %v614_v29, %v988_v24  ;;  %v211_v33 = vpop.f32.mrb[3].mxu0 }
 0x165   :  { %v212_v34 = vadd.f32 %v988_v24, %v211_v33  ;;  %653 = vmatprep.mubr.f32.mxu1 %v240_v30 }
 0x166   :  { %654 = vmatmul.mubr.f32.vlgmr.msra.gmra.mrb[0].mxu1 %v241_v31  ;;  %v243_v37 = vmax.f32 %v217_v32, 0.0 }
 0x167   :  { %v242_v35 = vmax.f32 %v212_v34, 0.0  ;;  %v617_v36 = vpop.f32.mrb[4].mxu0  ;;  %813 = vmatpush3.bf16.msra.mxu1 %v773_v6 }
 0x168   :  { %v227_v38 = vadd.f32 %v617_v36, %v988_v24  ;;  %v221_v39 = vpop.f32.mrb[5].mxu0  ;;  %806 = vmatprep.subr.bf16.mxu1 %v777_v8 }
 0x169   :  { %v222_v40 = vadd.f32 %v988_v24, %v221_v39  ;;  %656 = vmatprep.mubr.f32.mxu1 %v242_v35 }
 0x16a   :  { %657 = vmatmul.mubr.f32.gmra.mrb[2].mxu1 %v243_v37  ;;  %v245_v43 = vmax.f32 %v227_v38, 0.0 }
 0x16b   :  { %v244_v41 = vmax.f32 %v222_v40, 0.0  ;;  %v620_v42 = vpop.f32.mrb[6].mxu0  ;;  %814 = vmatpush3.bf16.msra.mxu1 %v777_v8 }
 0x16c   :  { %v237_v44 = vadd.f32 %v620_v42, %v988_v24  ;;  %v231_v45 = vpop.f32.mrb[7].mxu0  ;;  %807 = vmatprep.subr.bf16.mxu1 %v781_v11 }
 0x16d   :  { %v232_v46 = vadd.f32 %v988_v24, %v231_v45  ;;  %659 = vmatprep.mubr.f32.mxu1 %v244_v41 }
 0x16e   :  { %660 = vmatmul.mubr.f32.gmra.mrb[4].mxu1 %v245_v43  ;;  %v247_v48 = vmax.f32 %v237_v44, 0.0 }
 0x16f   :  { %v246_v47 = vmax.f32 %v232_v46, 0.0  ;;  %815 = vmatpush3.bf16.msra.mxu1 %v781_v11 }
 0x170   :  { %808 = vmatprep.subr.bf16.mxu1 %v785_v14 }
 0x171   :  { %662 = vmatprep.mubr.f32.mxu1 %v246_v47 }
 0x172   :  { %663 = vmatmul.mubr.f32.gmra.mrb[6].mxu1 %v247_v48 }
 0x173   :  { %816 = vmatpush3.bf16.msra.mxu1 %v785_v14 }
 0x174   :  { %809 = vmatprep.subr.bf16.mxu1 %v789_v17 }
 0x177   :  { %817 = vmatpush3.bf16.msra.mxu1 %v789_v17 }
 0x178   :  { %810 = vmatprep.subr.bf16.mxu1 %v793_v20 }
 0x17b   :  { %818 = vmatpush3.bf16.msra.mxu1 %v793_v20 }
 0x17c   :  { %811 = vmatprep.subr.bf16.mxu1 %v797_v23 }
 0x17f   :  { %819 = vmatpush3.bf16.msra.mxu1 %v797_v23 }
 0x180   :  { %812 = vmatprep.subr.bf16.mxu1 %v801_v51 }
 0x183   :  { %820 = vmatpush3.bf16.msra.mxu1 %v801_v51 }
 0x239   :  { %v655_v52 = vpop.f32.mrb[0].mxu1 }
 0x23a   :  { %v320_v53 = vadd.f32 %v655_v52, %v988_v24  ;;  %v314_v54 = vpop.f32.mrb[1].mxu1 }
 0x23b   :  { %v315_v55 = vadd.f32 %v988_v24, %v314_v54 }
 0x23c   :  { %v354_v58 = vmax.f32 %v320_v53, 0.0 }
 0x23d   :  { %v353_v56 = vmax.f32 %v315_v55, 0.0  ;;  %v658_v57 = vpop.f32.mrb[2].mxu1 }
 0x23e   :  { %v330_v59 = vadd.f32 %v658_v57, %v988_v24  ;;  %v324_v60 = vpop.f32.mrb[3].mxu1 }
 0x23f   :  { %v325_v61 = vadd.f32 %v988_v24, %v324_v60  ;;  %697 = vmatprep.mubr.f32.mxu0 %v353_v56 }
 0x240   :  { %698 = vmatmul.mubr.f32.vlgmr.msra.gmra.mrb[8].mxu0 %v354_v58  ;;  %v356_v0 = vmax.f32 %v330_v59, 0.0 }
 0x241   :  { %v355_v62 = vmax.f32 %v325_v61, 0.0  ;;  %v661_v63 = vpop.f32.mrb[4].mxu1 }
 0x242   :  { %v340_v1 = vadd.f32 %v661_v63, %v988_v24  ;;  %v334_v2 = vpop.f32.mrb[5].mxu1 }
 0x243   :  { %v335_v3 = vadd.f32 %v988_v24, %v334_v2  ;;  %700 = vmatprep.mubr.f32.mxu0 %v355_v62 }
 0x244   :  { %701 = vmatmul.mubr.f32.gmra.mrb[10].mxu0 %v356_v0  ;;  %v358_v6 = vmax.f32 %v340_v1, 0.0 }
 0x245   :  { %v357_v4 = vmax.f32 %v335_v3, 0.0  ;;  %v664_v5 = vpop.f32.mrb[6].mxu1 }
 0x246   :  { %v350_v7 = vadd.f32 %v664_v5, %v988_v24  ;;  %v344_v8 = vpop.f32.mrb[7].mxu1 }
 0x247   :  { %v345_v9 = vadd.f32 %v988_v24, %v344_v8  ;;  %703 = vmatprep.mubr.f32.mxu1 %v357_v4 }
 0x248   :  { %704 = vmatmul.mubr.f32.vlgmr.msra.gmra.mrb[8].mxu1 %v358_v6  ;;  %v360_v11 = vmax.f32 %v350_v7, 0.0 }
 0x249   :  { %v359_v10 = vmax.f32 %v345_v9, 0.0 }
 0x24b   :  { %706 = vmatprep.mubr.f32.mxu1 %v359_v10 }
 0x24c   :  { %707 = vmatmul.mubr.f32.gmra.mrb[10].mxu1 %v360_v11 }
 0x313   :  { %v699_v13 = vpop.f32.mrb[8].mxu0 }
 0x314   :  { %v456_v14 = vadd.f32 %v699_v13, %v504_v12  ;;  %v450_v15 = vpop.f32.mrb[9].mxu0 }
 0x315   :  { %v451_v16 = vadd.f32 %v504_v12, %v450_v15 }
 0x316   :  { %490 = vst [vmem:[%s1046_s7 + $0x8] sm:$0xff] %v456_v14 }
 0x317   :  { %489 = vst [vmem:[%s1046_s7] sm:$0xff] %v451_v16  ;;  %v702_v17 = vpop.f32.mrb[10].mxu0 }
 0x318   :  { %v466_v18 = vadd.f32 %v702_v17, %v504_v12  ;;  %v460_v19 = vpop.f32.mrb[11].mxu0 }
 0x319   :  { %v461_v20 = vadd.f32 %v504_v12, %v460_v19 }
 0x31a   :  { %492 = vst [vmem:[%s1046_s7 + $0x18] sm:$0xff] %v466_v18 }
 0x31b   :  { %491 = vst [vmem:[%s1046_s7 + $0x10] sm:$0xff] %v461_v20  ;;  %v705_v21 = vpop.f32.mrb[8].mxu1 }
 0x31c   :  { %v476_v22 = vadd.f32 %v705_v21, %v504_v12  ;;  %v470_v23 = vpop.f32.mrb[9].mxu1 }
 0x31d   :  { %v471_v24 = vadd.f32 %v504_v12, %v470_v23 }
 0x31e   :  { %494 = vst [vmem:[%s1046_s7 + $0x28] sm:$0xff] %v476_v22 }
 0x31f   :  { %493 = vst [vmem:[%s1046_s7 + $0x20] sm:$0xff] %v471_v24  ;;  %v708_v25 = vpop.f32.mrb[10].mxu1 }
 0x320   :  { %v486_v26 = vadd.f32 %v708_v25, %v504_v12  ;;  %v480_v27 = vpop.f32.mrb[11].mxu1 }
 0x321   :  { %v481_v28 = vadd.f32 %v504_v12, %v480_v27 }
 0x322   :  { %496 = vst [vmem:[%s1046_s7 + $0x38] sm:$0xff] %v486_v26 }
 0x323   :  { %495 = vst [vmem:[%s1046_s7 + $0x30] sm:$0xff] %v481_v28 }

</bundles_post_ra>
